<compile_context>
chip_gen: v6e
topology: v6e:2x2x1
jax: 0.10.0
libtpu: 0.0.40
codegen_flags: <defaults>
</compile_context>

<pallas_src>
import functools

import jax
import jax.numpy as jnp
from jax import lax
from jax.experimental import pallas as pl
from jax.experimental.pallas import tpu as pltpu


def _attention_kernel(x_ref, wq_ref, wk_ref, wv_ref, wp_ref, bp_ref,
                      o_ref, acc_ref, *, head_dim: int):
    # x_ref:   (1, N, C)  bf16 activations of this batch element
    # wq/wk/wv_ref: (1, C, D) bf16 per-head projection weights
    # wp_ref:  (1, D, C)  bf16 per-head slice of the output projection
    # bp_ref:  (1, C)     f32 output-projection bias
    # o_ref:   (1, N, C)  output block (same block for every head -> accumulator)
    # acc_ref: (N, C)     f32 VMEM scratch accumulating the output projection
    h = pl.program_id(1)

    @pl.when(h == 0)
    def _init():
        acc_ref[...] = jnp.zeros_like(acc_ref)

    x = x_ref[0]                                   # (N, C) bf16
    scale = head_dim ** (-0.5)

    # Per-head q/k/v projections: contract over C (full MXU width), f32 accumulate.
    q = jnp.dot(x, wq_ref[0], preferred_element_type=jnp.float32) * scale   # (N, D)
    k = jnp.dot(x, wk_ref[0], preferred_element_type=jnp.float32)           # (N, D)
    v = jnp.dot(x, wv_ref[0], preferred_element_type=jnp.float32)           # (N, D)

    # Scores: contract head dims of q and k directly (no explicit transpose).
    s = lax.dot_general(q.astype(jnp.bfloat16), k.astype(jnp.bfloat16),
                        (((1,), (1,)), ((), ())),
                        preferred_element_type=jnp.float32)                 # (N, N)

    # Softmax in f32; normalization deferred until after the PV matmul.
    m = jnp.max(s, axis=-1, keepdims=True)
    p = jnp.exp(s - m)
    l = jnp.sum(p, axis=-1, keepdims=True)

    o = jnp.dot(p.astype(jnp.bfloat16), v.astype(jnp.bfloat16),
                preferred_element_type=jnp.float32)                         # (N, D)
    o = o * pl.reciprocal(l, approx=True)

    # Output projection, decomposed per head: acc += o_h @ Wproj_h  ((D, C) slice).
    acc_ref[...] += jnp.dot(o.astype(jnp.bfloat16), wp_ref[0],
                            preferred_element_type=jnp.float32)             # (N, C)

    @pl.when(h == pl.num_programs(1) - 1)
    def _finalize():
        o_ref[0] = (acc_ref[...] + bp_ref[...]).astype(o_ref.dtype)


def prepare_attention_params(w_qkv, w_proj, b_proj, *, num_heads: int):
    """One-time transform of PyTorch nn.Linear weights into the kernel layout.

    w_qkv: (3C, C), w_proj: (C, C), b_proj: (C,)  (PyTorch (out, in) layout).
    Done once at model load, not on the per-call path.
    """
    three_c, C = w_qkv.shape
    assert three_c == 3 * C and C % num_heads == 0
    D = C // num_heads
    w = w_qkv.reshape(3, num_heads, D, C)                       # rows -> (qkv, head, dim)
    w_q = jnp.transpose(w[0], (0, 2, 1)).astype(jnp.bfloat16)   # (H, C, D)
    w_k = jnp.transpose(w[1], (0, 2, 1)).astype(jnp.bfloat16)   # (H, C, D)
    w_v = jnp.transpose(w[2], (0, 2, 1)).astype(jnp.bfloat16)   # (H, C, D)
    w_p = jnp.transpose(w_proj.reshape(C, num_heads, D),
                        (1, 2, 0)).astype(jnp.bfloat16)         # (H, D, C)
    b_p = b_proj.reshape(1, C).astype(jnp.float32)              # (1, C)
    return w_q, w_k, w_v, w_p, b_p


def attention_forward(x, params, *, num_heads: int):
    """x: (B, N, C) -> (B, N, C); params from prepare_attention_params."""
    w_q, w_k, w_v, w_p, b_p = params
    B, N, C = x.shape
    assert C % num_heads == 0
    D = C // num_heads

    x_bf = x.astype(jnp.bfloat16)
    out_itemsize = jnp.dtype(x.dtype).itemsize

    # Explicit per-step VMEM budget (double-buffered inputs/outputs + scratch +
    # f32 intermediates), clamped to stay inside v7x's 64 MiB physical VMEM.
    est = (2 * N * C * 2                 # x block, bf16, double-buffered
           + 2 * 3 * C * D * 2           # Wq/Wk/Wv head blocks
           + 2 * D * C * 2               # Wproj head block
           + 2 * 1 * C * 4               # bias block
           + 2 * N * C * out_itemsize    # output block
           + N * C * 4                   # f32 accumulator scratch
           + N * N * 4                   # per-head f32 scores
           + 6 * N * D * 4)              # q/k/v/p-cast/o intermediates
    vmem_limit = int(min(64 * 1024 * 1024, max(16 * 1024 * 1024, 2 * est)))

    kernel = functools.partial(_attention_kernel, head_dim=D)

    return pl.pallas_call(
        kernel,
        out_shape=jax.ShapeDtypeStruct((B, N, C), x.dtype),
        grid_spec=pltpu.PrefetchScalarGridSpec(
            num_scalar_prefetch=0,
            grid=(B, num_heads),
            in_specs=[
                pl.BlockSpec((1, N, C), lambda b, h: (b, 0, 0)),   # x
                pl.BlockSpec((1, C, D), lambda b, h: (h, 0, 0)),   # Wq head h
                pl.BlockSpec((1, C, D), lambda b, h: (h, 0, 0)),   # Wk head h
                pl.BlockSpec((1, C, D), lambda b, h: (h, 0, 0)),   # Wv head h
                pl.BlockSpec((1, D, C), lambda b, h: (h, 0, 0)),   # Wproj head h
                pl.BlockSpec((1, C), lambda b, h: (0, 0)),         # proj bias
            ],
            out_specs=pl.BlockSpec((1, N, C), lambda b, h: (b, 0, 0)),
            scratch_shapes=[pltpu.VMEM((N, C), jnp.float32)],
        ),
        compiler_params=pltpu.CompilerParams(
            dimension_semantics=("parallel", "arbitrary"),
            vmem_limit_bytes=vmem_limit),
    )(x_bf, w_q, w_k, w_v, w_p, b_p)


def reference_attention(x, w_qkv, w_proj, b_proj, *, num_heads: int):
    """Pure-JAX f32 reference mirroring the PyTorch forward (eval mode)."""
    B, N, C = x.shape
    head_dim = C // num_heads
    scale = head_dim ** (-0.5)
    qkv = jnp.einsum('bnc,oc->bno', x, w_qkv)                 # (B, N, 3C)
    qkv = qkv.reshape(B, N, 3, num_heads, head_dim)
    qkv = jnp.transpose(qkv, (2, 0, 3, 1, 4))                 # (3, B, H, N, D)
    q, k, v = qkv[0], qkv[1], qkv[2]
    attn = jnp.einsum('bhnd,bhmd->bhnm', q * scale, k)
    attn = jax.nn.softmax(attn, axis=-1)
    out = jnp.einsum('bhnm,bhmd->bhnd', attn, v)              # (B, H, N, D)
    out = jnp.transpose(out, (0, 2, 1, 3)).reshape(B, N, C)
    return jnp.einsum('bnc,oc->bno', out, w_proj) + b_proj


if __name__ == "__main__":
    B, N, C = 2, 8, 32
    num_heads = 8

    key = jax.random.PRNGKey(0)
    kx, kw1, kw2, kb = jax.random.split(key, 4)

    x = jax.random.normal(kx, (B, N, C), dtype=jnp.float32)
    # deterministic synthetic params (nn.Linear shapes: (out, in) and (out,))
    w_qkv = jax.random.normal(kw1, (3 * C, C), dtype=jnp.float32) * 0.05
    w_proj = jax.random.normal(kw2, (C, C), dtype=jnp.float32) * 0.05
    b_proj = jax.random.normal(kb, (C,), dtype=jnp.float32) * 0.05

    params = prepare_attention_params(w_qkv, w_proj, b_proj, num_heads=num_heads)
    out = attention_forward(x, params, num_heads=num_heads)
    out = jax.block_until_ready(out)

    ref = reference_attention(x, w_qkv, w_proj, b_proj, num_heads=num_heads)
    assert out.shape == (B, N, C)
    # bf16 MXU operands vs f32 reference -> loosened tolerance.
    assert jnp.allclose(out, ref, atol=2e-2, rtol=2e-2), "mismatch vs reference"

    print("KERNEL_OK")
</pallas_src>

<mosaic_0001>
module attributes {stable_mosaic.version = 11 : i64} {
  func.func @_attention_kernel(%arg0: i32, %arg1: i32, %arg2: memref<1x8x32xbf16, #tpu.memory_space<vmem>>, %arg3: memref<1x32x4xbf16, #tpu.memory_space<vmem>>, %arg4: memref<1x32x4xbf16, #tpu.memory_space<vmem>>, %arg5: memref<1x32x4xbf16, #tpu.memory_space<vmem>>, %arg6: memref<1x4x32xbf16, #tpu.memory_space<vmem>>, %arg7: memref<1x32xf32, #tpu.memory_space<vmem>>, %arg8: memref<1x8x32xf32, #tpu.memory_space<vmem>>, %arg9: memref<8x32xf32, #tpu.memory_space<vmem>>) attributes {dimension_semantics = [#tpu.dimension_semantics<parallel>, #tpu.dimension_semantics<arbitrary>], iteration_bounds = array<i64: 2, 8>, scalar_prefetch = 0 : i64, scratch_operands = 1 : i64, tpu.core_type = #tpu.core_type<tc>, window_params = [{transform_indices = @transform_0, window_bounds = array<i64: 1, 8, 32>}, {transform_indices = @transform_1, window_bounds = array<i64: 1, 32, 4>}, {transform_indices = @transform_2, window_bounds = array<i64: 1, 32, 4>}, {transform_indices = @transform_3, window_bounds = array<i64: 1, 32, 4>}, {transform_indices = @transform_4, window_bounds = array<i64: 1, 4, 32>}, {pipeline_mode = #tpu.pipeline_mode<synchronous>, transform_indices = @transform_5, window_bounds = array<i64: 1, 32>}, {transform_indices = @transform_6, window_bounds = array<i64: 1, 8, 32>}]} {
    %c0_i32 = arith.constant 0 : i32
    %0 = arith.cmpi eq, %arg1, %c0_i32 : i32
    %1 = arith.extui %0 : i1 to i32
    %c0_i32_0 = arith.constant 0 : i32
    %2 = arith.cmpi ne, %1, %c0_i32_0 : i32
    scf.if %2 {
      %cst_28 = arith.constant 0.000000e+00 : f32
      %42 = vector.broadcast %cst_28 : f32 to vector<8x32xf32>
      %c0_29 = arith.constant 0 : index
      %c0_30 = arith.constant 0 : index
      %43 = vector.load %arg9[%c0_29, %c0_30] : memref<8x32xf32, #tpu.memory_space<vmem>>, vector<8x32xf32>
      tpu.vector_store %arg9[%c0_29, %c0_30], %42 {strides = array<i32>} : memref<8x32xf32, #tpu.memory_space<vmem>>, vector<8x32xf32>,
    } else {
    }
    %c0 = arith.constant 0 : index
    %c0_1 = arith.constant 0 : index
    %c0_2 = arith.constant 0 : index
    %3 = vector.load %arg2[%c0, %c0_1, %c0_2] : memref<1x8x32xbf16, #tpu.memory_space<vmem>>, vector<1x8x32xbf16>
    %4 = vector.shape_cast %3 : vector<1x8x32xbf16> to vector<8x32xbf16>
    %c0_3 = arith.constant 0 : index
    %c0_4 = arith.constant 0 : index
    %c0_5 = arith.constant 0 : index
    %5 = vector.load %arg3[%c0_3, %c0_4, %c0_5] : memref<1x32x4xbf16, #tpu.memory_space<vmem>>, vector<1x32x4xbf16>
    %6 = vector.shape_cast %5 : vector<1x32x4xbf16> to vector<32x4xbf16>
    %cst = arith.constant dense<0.000000e+00> : vector<8x4xf32>
    %7 = tpu.matmul %4, %6, %cst {dimension_numbers = #tpu.dot_dimension_numbers<[1], [0], [0], [1], [0, 0, 1, 1], [], []>} : vector<8x32xbf16>, vector<32x4xbf16>, vector<8x4xf32> -> vector<8x4xf32>
    %cst_6 = arith.constant 5.000000e-01 : f32
    %8 = vector.broadcast %cst_6 : f32 to vector<8x4xf32>
    %9 = arith.mulf %7, %8 : vector<8x4xf32>
    %c0_7 = arith.constant 0 : index
    %c0_8 = arith.constant 0 : index
    %c0_9 = arith.constant 0 : index
    %10 = vector.load %arg4[%c0_7, %c0_8, %c0_9] : memref<1x32x4xbf16, #tpu.memory_space<vmem>>, vector<1x32x4xbf16>
    %11 = vector.shape_cast %10 : vector<1x32x4xbf16> to vector<32x4xbf16>
    %cst_10 = arith.constant dense<0.000000e+00> : vector<8x4xf32>
    %12 = tpu.matmul %4, %11, %cst_10 {dimension_numbers = #tpu.dot_dimension_numbers<[1], [0], [0], [1], [0, 0, 1, 1], [], []>} : vector<8x32xbf16>, vector<32x4xbf16>, vector<8x4xf32> -> vector<8x4xf32>
    %c0_11 = arith.constant 0 : index
    %c0_12 = arith.constant 0 : index
    %c0_13 = arith.constant 0 : index
    %13 = vector.load %arg5[%c0_11, %c0_12, %c0_13] : memref<1x32x4xbf16, #tpu.memory_space<vmem>>, vector<1x32x4xbf16>
    %14 = vector.shape_cast %13 : vector<1x32x4xbf16> to vector<32x4xbf16>
    %cst_14 = arith.constant dense<0.000000e+00> : vector<8x4xf32>
    %15 = tpu.matmul %4, %14, %cst_14 {dimension_numbers = #tpu.dot_dimension_numbers<[1], [0], [0], [1], [0, 0, 1, 1], [], []>} : vector<8x32xbf16>, vector<32x4xbf16>, vector<8x4xf32> -> vector<8x4xf32>
    %16 = arith.truncf %9 : vector<8x4xf32> to vector<8x4xbf16>
    %17 = arith.truncf %12 : vector<8x4xf32> to vector<8x4xbf16>
    %cst_15 = arith.constant dense<0.000000e+00> : vector<8x8xf32>
    %18 = tpu.matmul %16, %17, %cst_15 {dimension_numbers = #tpu.dot_dimension_numbers<[1], [1], [0], [0], [0, 0, 1, 0], [], []>} : vector<8x4xbf16>, vector<8x4xbf16>, vector<8x8xf32> -> vector<8x8xf32>
    %cst_16 = arith.constant dense<0xFF800000> : vector<8xf32>
    %19 = vector.multi_reduction <maximumf>, %18, %cst_16 [1] : vector<8x8xf32> to vector<8xf32>
    %20 = vector.shape_cast %19 : vector<8xf32> to vector<8x1xf32>
    %21 = vector.broadcast %20 : vector<8x1xf32> to vector<8x8xf32>
    %22 = arith.subf %18, %21 : vector<8x8xf32>
    %23 = math.exp %22 : vector<8x8xf32>
    %cst_17 = arith.constant dense<0.000000e+00> : vector<8xf32>
    %24 = vector.multi_reduction <add>, %23, %cst_17 [1] : vector<8x8xf32> to vector<8xf32>
    %25 = vector.shape_cast %24 : vector<8xf32> to vector<8x1xf32>
    %26 = arith.truncf %23 : vector<8x8xf32> to vector<8x8xbf16>
    %27 = arith.truncf %15 : vector<8x4xf32> to vector<8x4xbf16>
    %cst_18 = arith.constant dense<0.000000e+00> : vector<8x4xf32>
    %28 = tpu.matmul %26, %27, %cst_18 {dimension_numbers = #tpu.dot_dimension_numbers<[1], [0], [0], [1], [0, 0, 1, 1], [], []>} : vector<8x8xbf16>, vector<8x4xbf16>, vector<8x4xf32> -> vector<8x4xf32>
    %29 = tpu.reciprocal %25 {approx = true} : vector<8x1xf32> -> vector<8x1xf32>
    %30 = vector.broadcast %29 : vector<8x1xf32> to vector<8x4xf32>
    %31 = arith.mulf %28, %30 : vector<8x4xf32>
    %c0_19 = arith.constant 0 : index
    %c0_20 = arith.constant 0 : index
    %32 = vector.load %arg9[%c0_19, %c0_20] : memref<8x32xf32, #tpu.memory_space<vmem>>, vector<8x32xf32>
    %33 = arith.truncf %31 : vector<8x4xf32> to vector<8x4xbf16>
    %c0_21 = arith.constant 0 : index
    %c0_22 = arith.constant 0 : index
    %c0_23 = arith.constant 0 : index
    %34 = vector.load %arg6[%c0_21, %c0_22, %c0_23] : memref<1x4x32xbf16, #tpu.memory_space<vmem>>, vector<1x4x32xbf16>
    %35 = vector.shape_cast %34 : vector<1x4x32xbf16> to vector<4x32xbf16>
    %cst_24 = arith.constant dense<0.000000e+00> : vector<8x32xf32>
    %36 = tpu.matmul %33, %35, %cst_24 {dimension_numbers = #tpu.dot_dimension_numbers<[1], [0], [0], [1], [0, 0, 1, 1], [], []>} : vector<8x4xbf16>, vector<4x32xbf16>, vector<8x32xf32> -> vector<8x32xf32>
    %37 = arith.addf %32, %36 : vector<8x32xf32>
    %c0_25 = arith.constant 0 : index
    %c0_26 = arith.constant 0 : index
    %38 = vector.load %arg9[%c0_25, %c0_26] : memref<8x32xf32, #tpu.memory_space<vmem>>, vector<8x32xf32>
    tpu.vector_store %arg9[%c0_25, %c0_26], %37 {strides = array<i32>} : memref<8x32xf32, #tpu.memory_space<vmem>>, vector<8x32xf32>,
    %c7_i32 = arith.constant 7 : i32
    %39 = arith.cmpi eq, %arg1, %c7_i32 : i32
    %40 = arith.extui %39 : i1 to i32
    %c0_i32_27 = arith.constant 0 : i32
    %41 = arith.cmpi ne, %40, %c0_i32_27 : i32
    scf.if %41 {
      %c0_28 = arith.constant 0 : index
      %c0_29 = arith.constant 0 : index
      %42 = vector.load %arg9[%c0_28, %c0_29] : memref<8x32xf32, #tpu.memory_space<vmem>>, vector<8x32xf32>
      %c0_30 = arith.constant 0 : index
      %c0_31 = arith.constant 0 : index
      %43 = vector.load %arg7[%c0_30, %c0_31] : memref<1x32xf32, #tpu.memory_space<vmem>>, vector<1x32xf32>
      %44 = vector.broadcast %43 : vector<1x32xf32> to vector<8x32xf32>
      %45 = arith.addf %42, %44 : vector<8x32xf32>
      %c0_32 = arith.constant 0 : index
      %c0_33 = arith.constant 0 : index
      %c0_34 = arith.constant 0 : index
      %46 = vector.load %arg8[%c0_32, %c0_33, %c0_34] : memref<1x8x32xf32, #tpu.memory_space<vmem>>, vector<1x8x32xf32>
      %47 = vector.shape_cast %46 : vector<1x8x32xf32> to vector<8x32xf32>
      %48 = vector.shape_cast %45 : vector<8x32xf32> to vector<1x8x32xf32>
      tpu.vector_store %arg8[%c0_32, %c0_33, %c0_34], %48 {strides = array<i32>} : memref<1x8x32xf32, #tpu.memory_space<vmem>>, vector<1x8x32xf32>,
    } else {
    }
    return
  }
  func.func @transform_0(%arg0: i32, %arg1: i32) -> (i32, i32, i32) {
    %c0_i32 = arith.constant 0 : i32
    %c0_i32_0 = arith.constant 0 : i32
    %c0_i32_1 = arith.constant 0 : i32
    return %arg0, %c0_i32, %c0_i32_0 : i32, i32, i32
  }
  func.func @transform_1(%arg0: i32, %arg1: i32) -> (i32, i32, i32) {
    %c0_i32 = arith.constant 0 : i32
    %c0_i32_0 = arith.constant 0 : i32
    %c0_i32_1 = arith.constant 0 : i32
    return %arg1, %c0_i32, %c0_i32_0 : i32, i32, i32
  }
  func.func @transform_2(%arg0: i32, %arg1: i32) -> (i32, i32, i32) {
    %c0_i32 = arith.constant 0 : i32
    %c0_i32_0 = arith.constant 0 : i32
    %c0_i32_1 = arith.constant 0 : i32
    return %arg1, %c0_i32, %c0_i32_0 : i32, i32, i32
  }
  func.func @transform_3(%arg0: i32, %arg1: i32) -> (i32, i32, i32) {
    %c0_i32 = arith.constant 0 : i32
    %c0_i32_0 = arith.constant 0 : i32
    %c0_i32_1 = arith.constant 0 : i32
    return %arg1, %c0_i32, %c0_i32_0 : i32, i32, i32
  }
  func.func @transform_4(%arg0: i32, %arg1: i32) -> (i32, i32, i32) {
    %c0_i32 = arith.constant 0 : i32
    %c0_i32_0 = arith.constant 0 : i32
    %c0_i32_1 = arith.constant 0 : i32
    return %arg1, %c0_i32, %c0_i32_0 : i32, i32, i32
  }
  func.func @transform_5(%arg0: i32, %arg1: i32) -> (i32, i32) {
    %c0_i32 = arith.constant 0 : i32
    %c0_i32_0 = arith.constant 0 : i32
    %c0_i32_1 = arith.constant 0 : i32
    return %c0_i32, %c0_i32_0 : i32, i32
  }
  func.func @transform_6(%arg0: i32, %arg1: i32) -> (i32, i32, i32) {
    %c0_i32 = arith.constant 0 : i32
    %c0_i32_0 = arith.constant 0 : i32
    %c0_i32_1 = arith.constant 0 : i32
    return %arg0, %c0_i32, %c0_i32_0 : i32, i32, i32
  }
}

</mosaic_0001>

<bundles_post_ra>
// kernel: tpu_custom_call.1
= control target key start
LH: loop header
LB: loop body
LE: loop exit
PB: predicated region body
PF: predicated region fallthrough
CT: control target
= control target key end

     0   :  { %11 = vsyncpa [#allocation4], 0  ;;  %s1308_s0 = inlined_call_operand.vmem [shape: bf16[2,8,32], index: 0, kind: input, shape index: {}]   ;;  %s1309_s1 = inlined_call_operand.vmem [shape: bf16[8,32,4], index: 1, kind: input, shape index: {}]   ;;  %s1310_s2 = inlined_call_operand.vmem [shape: bf16[8,32,4], index: 2, kind: input, shape index: {}]   ;;  %s1311_s3 = inlined_call_operand.vmem [shape: bf16[8,32,4], index: 3, kind: input, shape index: {}]   ;;  %s1312_s4 = inlined_call_operand.vmem [shape: bf16[8,4,32], index: 4, kind: input, shape index: {}]   ;;  %s1313_s5 = inlined_call_operand.vmem [shape: f32[1,32], index: 5, kind: input, shape index: {}]   ;;  %s1314_s6 = inlined_call_operand.hbm [shape: f32[2,8,32], index: 6, kind: output, shape index: {}]  }
   0x1   :  { %13 = vsyncpa [#allocation4 + $0x1], 0  ;;  %s1135_s21 = smov 0   ;;  %s1137_s22 = smov 0  }
   0x2   :  { %s1139_s23 = smov 0   ;;  %s1141_s24 = smov 0  }
   0x3   :  { %s1143_s25 = smov 0   ;;  %s1145_s26 = smov 0  }
   0x4   :  { %s1147_s27 = smov 0   ;;  %s1149_s28 = smov 0  }
   0x5 LB: > { %1322 = sst [smem:[#allocation6_spill]] %s1066_s21  ;;  %s825_s29 = sadd.s32 4294967295, %s1094_s28   ;;  %s1094_s28 = sphi %s1149_s28, %s19_s28   ;;  %s1090_s27 = sphi %s1147_s27, %s1340_s27   ;;  %s1086_s26 = sphi %s1145_s26, %s1343_s26   ;;  %s1082_s25 = sphi %s1143_s25, %s1338_s25   ;;  %s1078_s24 = sphi %s1141_s24, %s1337_s24   ;;  %s1074_s23 = sphi %s1139_s23, %s1336_s23   ;;  %s1070_s22 = sphi %s1137_s22, %s1342_s22   ;;  %s1066_s21 = sphi %s1135_s21, %s1341_s21  }
   0x6   : > { %1323 = sst [smem:[#allocation7_spill]] %s1074_s23  ;;  %s826_s30 = sadd.s32 4294967294, %s1094_s28  }
   0x7   : > { %1324 = sst [smem:[#allocation8_spill]] %s1086_s26  ;;  %s28_s7 = sadd.s32 1, %s1086_s26 }
   0x8   : > { %1325 = sst [smem:[#allocation9_spill]] %s1090_s27  ;;  %p29_p0 = scmp.ge.s32.totalorder %s28_s7, 8 }
   0x9   : > { %s31_s8 = sadd.s32 1, %s1090_s27  ;;  %p199_p1 = scmp.ne.s32.totalorder %s1074_s23, %s1070_s22 }
   0xa   : > { %p200_p2 = scmp.eq.s32.totalorder %s825_s29, 15  ;;  %s1345_s7 = smov (%p29_p0, %s28_s7), 0 }
   0xb   : > { %1326 = sst [smem:[#allocation10_spill]] %s1345_s7  ;;  %s1347_s8 = smov (!%p29_p0, %s31_s8), %s1090_s27 }
   0xc   : > { %p1184_p3 = por %p200_p2, %p199_p1  ;;  %p205_p4 = scmp.ne.s32.totalorder %s1070_s22, %s1066_s21 }
   0xd   : > { %p33_p5 = scmp.ge.s32.totalorder %s1347_s8, 2  ;;  %p206_p6 = scmp.eq.s32.totalorder %s826_s30, 15 }
   0xe   : > { %p829_p7 = scmp.ge.s32.totalorder %s1094_s28, 1  ;;  %p265_p8 = scmp.lt.s32.totalorder %s1094_s28, 17 }
   0xf   : > { %s1349_s8 = smov (%p33_p5, %s1347_s8), 0  ;;  %p1194_p9 = por %p206_p6, %p205_p4 }
  0x10   : > { %1328 = sst [smem:[#allocation11_spill]] %s1349_s8  ;;  %p266_p10 = pnand %p829_p7, %p265_p8 }
  0x11   : > { %s1329_s10 = scalar_select %p1194_p9, 1, 0 }
  0x12   : > { %s186_s11 = ssub.s32 %s1090_s27, %s1349_s8  ;;  %s189_s12 = sadd.s32 1, %s1074_s23 }
  0x13   : > { %1330 = sst [smem:[#allocation12_spill]] %s1329_s10  ;;  %p187_p11 = scmp.eq.s32.totalorder %s186_s11, 0 }
  0x14   : > { %269 = sbr.rel (%p266_p10) target bundleno = 1025 (0x401), region = 44  ;;  %s1318_s14 = sand.u32 (!%p266_p10), 1, %s1070_s22  }
  0x15   : > { %s1202_s13 = scalar_select %p187_p11, %s1074_s23, %s189_s12  }
  0x16   : > { %p313_p12 = scmp.lt.s32.totalorder (!%p266_p10), %s1082_s25, 1  ;;  %s1208_s15 = sshll.u32 (!%p266_p10), %s1318_s14, 3 }
  0x17   : > { %1331 = sst [smem:[#allocation13_spill]] %s1202_s13  ;;  %p317_p13 = scmp.lt.s32.totalorder (!%p266_p10), %s1078_s24, 7 }
  0x18   : > { %p839_p0 = scmp.ne.s32.totalorder (!%p266_p10), %s1078_s24, 0 }
  0x19   : > { %s314_s16 = scalar_select %p313_p12, %s1082_s25, 1 }
  0x1a   : > { %s318_s17 = scalar_select %p317_p13, %s1078_s24, 7 }
  0x1b   : > { %s831_s18 = sshll.u32 %s314_s16, 2  ;;  %340 = sbr.rel (%p839_p0) target bundleno = 34 (0x22), region = 48 }
  0x1c   : > { %s316_s29 = scalar_lea.vmem %s1308_s0, %s831_s18  ;;  %s858_s30 = sshll.u32 %s318_s17, 4 }
  0x1d   : > { %s321_s8 = scalar_lea.vmem %s1309_s1, %s858_s30  ;;  %s326_s26 = scalar_lea.vmem %s1310_s2, %s858_s30 }
  0x1e   : > { %s1225_s23 = scalar_lea.vmem %s1311_s3, %s858_s30  ;;  %s838_s10 = sshll.u32 %s318_s17, 1 }
  0x1f   : > { %s1230_s19 = scalar_lea.vmem %s1312_s4, %s838_s10  ;;  %s312_s18 = scalar_lea.vmem [#allocation3], %s1208_s15 }
  0x20   : > { %vm341_vm0 = vcmask 261120   ;;  %v1096_v0 = vmov 0.0  }
  0x21   : > { %342 = vst.msk [vmem:[#allocation2] sm:$0xff] %vm341_vm0, %v1096_v0 }
  0x22 PF: > { %v992_v1 = vld [vmem:[%s326_s26 + $0x8] sm:$0xff]   ;;  %v1097_v2 = vmov 0.0   ;;  %v994_v4 = vld [vmem:[%s326_s26] sm:$0xff]   ;;  %vm1098_vm1 = vmmov 0   ;;  %vm360_vm2 = vcmask 261120   ;;  %vm519_vm3 = vcmask 31744  }
  0x23   : > { %884 = vmatprep.subr.bf16.mxu1 %v1097_v2  ;;  %876 = vmatprep.subr.bf16.mxu0 %v1097_v2  ;;  %v993_v3 = vld [vmem:[%s321_s8 + $0x8] sm:$0xff]   ;;  %v995_v5 = vld [vmem:[%s321_s8] sm:$0xff]   ;;  %vm566_vm4 = vcmask 64512   ;;  %vm581_vm5 = vcmask 1043456   ;;  %vm633_vm6 = vcmask 1041408   ;;  %p852_p1 = scmp.ne.s32.totalorder %s1078_s24, 7 }
  0x24   : > { %885 = vmatpush3.bf16.msra.mxu1 %v992_v1  ;;  %888 = vmatprep.mubr.msk.bf16.mxu1 %vm1098_vm1, %v1097_v2  ;;  %v343_v6 = vld [vmem:[%s316_s29] sm:$0xf]  ;;  %v996_v7 = vld [vmem:[%s1225_s23 + $0x8] sm:$0xff]  }
  0x25   : > { %877 = vmatpush3.bf16.msra.mxu0 %v993_v3  ;;  %886 = vmatprep.subr.bf16.mxu1 %v1097_v2  ;;  %v997_v8 = vld [vmem:[%s1225_s23] sm:$0xff]  }
  0x26   : > { %878 = vmatprep.subr.bf16.mxu0 %v1097_v2  ;;  %880 = vmatprep.mubr.msk.bf16.mxu0 %vm1098_vm1, %v1097_v2  ;;  %v629_v38 = vld [vmem:[%s1230_s19] sm:$0x3] }
  0x27   : > { %v635_v39 = vsel %vm633_vm6, %v629_v38, 0 }
  0x28   : > { %887 = vmatpush3.bf16.msra.mxu1 %v994_v4  ;;  %v627_v48 = vld [vmem:[#allocation2] sm:$0xff] }
  0x29   : > { %879 = vmatpush3.bf16.msra.mxu0 %v995_v5  ;;  %900 = vmatprep.subr.bf16.mxu1 %v1097_v2 }
  0x2a   : > { %892 = vmatprep.subr.bf16.mxu0 %v1097_v2 }
  0x2b   : > { %889 = vmatmul.mubr.msk.bf16.vlgmr.msra.gmra.mxu1 %vm360_vm2, %v343_v6 }
  0x2c   : > { %881 = vmatmul.mubr.msk.bf16.vlgmr.msra.gmra.mxu0 %vm360_vm2, %v343_v6  ;;  %902 = vmatprep.mubr.msk.bf16.mxu1 %vm1098_vm1, %v1097_v2 }
  0x2d   : > { %896 = vmatprep.mubr.msk.bf16.mxu0 %vm1098_vm1, %v1097_v2  ;;  %893 = vmatpush3.bf16.msra.mxu0 %v996_v7 }
  0x2e   : > { %894 = vmatprep.subr.bf16.mxu0 %v1097_v2 }
  0x31   : > { %895 = vmatpush3.bf16.msra.mxu0 %v997_v8 }
  0x32   : > { %906 = vmatprep.subr.bf16.mxu0 %v1097_v2 }
  0x34   : > { %897 = vmatmul.mubr.msk.bf16.vlgmr.msra.gmra.mxu0 %vm360_vm2, %v343_v6 }
  0x35   : > { %908 = vmatprep.mubr.msk.bf16.mxu0 %vm1098_vm1, %v1097_v2 }
  0xeb   : > { %v455_v9 = vpop.f32.mrf.mxu1 }
  0xec   : > { %v518_v10 = vpack.c.bf16 %v455_v9, %v455_v9  ;;  %v398_v11 = vpop.f32.mrf.mxu0 }
  0xed   : > { %v890_v12 = vpop.f32.mrf.mxu1  ;;  %v404_v14 = vmul.f32 0.5, %v398_v11 }
  0xee   : > { %v524_v13 = vsel %vm519_vm3, %v518_v10, 0  ;;  %v882_v15 = vpop.f32.mrf.mxu0 }
  0xef   : > { %v458_v16 = vpop.f32.mrf.mxu1  ;;  %901 = vmatpush3.bf16.xpose.msra.mxu1 %v524_v13  ;;  %v517_v19 = vpack.c.bf16 %v404_v14, %v404_v14 }
  0xf0   : > { %v401_v17 = vpop.f32.mrf.mxu0  ;;  %912 = vmatprep.subr.bf16.mxu1 %v1097_v2 }
  0xf1   : > { %v891_v18 = vpop.f32.mrf.mxu1 }
  0xf2   : > { %v883_v20 = vpop.f32.mrf.mxu0 }
  0xf4   : > { %v511_v26 = vpop.f32.mrf.mxu0 }
  0xf5   : > { %v577_v27 = vpack.c.bf16 %v511_v26, %v511_v26 }
  0xf6   : > { %903 = vmatmul.mubr.msk.bf16.vlgmr.msra.gmra.mxu1 %vm519_vm3, %v517_v19  ;;  %v898_v28 = vpop.f32.mrf.mxu0 }
  0xf7   : > { %914 = vmatprep.mubr.msk.bf16.mxu1 %vm1098_vm1, %v1097_v2  ;;  %v583_v29 = vsel %vm581_vm5, %v577_v27, 0  ;;  %913 = vmatpush3.bf16.msra.mxu1 %v635_v39 }
  0xf8   : > { %v514_v30 = vpop.f32.mrf.mxu0  ;;  %907 = vmatpush3.bf16.msra.mxu0 %v583_v29 }
  0xfa   : > { %v899_v31 = vpop.f32.mrf.mxu0 }
 0x1b6   : > { %v560_v21 = vpop.f32.mrf.mxu1 }
 0x1b7   : > { %v567_v22 = vsel %vm566_vm4, %v560_v21, -inf }
 0x1b8   : > { %568 = vmax.xlane.f32.xlu0 %v567_v22  ;;  %v904_v23 = vpop.f32.mrf.mxu1 }
 0x1ba   : > { %v563_v24 = vpop.f32.mrf.mxu1 }
 0x1bc   : > { %v905_v25 = vpop.f32.mrf.mxu1 }
 0x241   : > { %v569_v32 = vpop.xlane.xlu0 %568 }
 0x242   : > { %v570_v33 = vsub.f32 %v560_v21, %v569_v32 }
 0x244   : > { %v571_v34 = vmul.f32 1.442695, %v570_v33 }
 0x246   : > { %998 = vpow2.f32 %v571_v34 }
 0x253   : > { %v999_v35 = vpop.eup %998 }
 0x254   : > { %v573_v36 = vsel %vm566_vm4, %v999_v35, 0.0  ;;  %v576_v37 = vpack.c.bf16 %v999_v35, %v999_v35 }
 0x255   : > { %574 = vadd.xlane.f32.xlu0 %v573_v36 }
 0x256   : > { %909 = vmatmul.mubr.msk.bf16.vlgmr.msra.gmra.mxu0 %vm566_vm4, %v576_v37 }
 0x2de   : > { %v575_v40 = vpop.xlane.xlu0 %574 }
 0x2df   : > { %1000 = vrcp.f32 %v575_v40 }
 0x2ec   : > { %v1001_v41 = vpop.eup %1000 }
 0x316   : > { %v619_v42 = vpop.f32.mrf.mxu0 }
 0x317   : > { %v626_v43 = vmul.f32 %v1001_v41, %v619_v42 }
 0x318   : > { %v910_v44 = vpop.f32.mrf.mxu0 }
 0x319   : > { %v628_v45 = vpack.c.bf16 %v626_v43, %v626_v43 }
 0x31a   : > { %v622_v46 = vpop.f32.mrf.mxu0 }
 0x31b   : > { %915 = vmatmul.mubr.msk.bf16.vlgmr.msra.gmra.mxu1 %vm519_vm3, %v628_v45 }
 0x31c   : > { %v911_v47 = vpop.f32.mrf.mxu0 }
 0x3db   : > { %v671_v49 = vpop.f32.mrf.mxu1 }
 0x3dc   : > { %v677_v50 = vadd.f32 %v671_v49, %v627_v48 }
 0x3dd   : > { %v916_v51 = vpop.f32.mrf.mxu1  ;;  %682 = sbr.rel (%p852_p1) target bundleno = 1001 (0x3e9), region = 52 }
 0x3de   : > { %678 = vst.msk [vmem:[#allocation2] sm:$0xff] %vm360_vm2, %v677_v50 }
 0x3df   : > { %v674_v52 = vpop.f32.mrf.mxu1 }
 0x3e1   : > { %v917_v53 = vpop.f32.mrf.mxu1 }
 0x3e2   : > { %v853_v55 = vld [vmem:[%s1313_s5] ss:$0 sm:$0xff] }
 0x3e5   : > { %v683_v54 = vld [vmem:[#allocation2] sm:$0xff] }
 0x3e6   : > { %v691_v56 = vadd.f32 %v853_v55, %v683_v54 }
 0x3e8   : > { %692 = vst.msk [vmem:[%s312_s18] sm:$0xff] %vm360_vm2, %v691_v56 }
 0x3e9 PF: > { %s855_s26 = sshll.u32 %s1082_s25, 7  ;;  %s707_s8 = sshll.u32 %s312_s18, 4  ;;  %s708_s8 = int_to_ptr.vmem [resolvable:$true] %s707_s8 }
 0x3ea   : > { %s705_s24 = scalar_lea.hbm %s1314_s6, %s855_s26  ;;  %s1332_s10 = sand.u32 1, %s1070_s22  }
 0x3eb   : > { %s694_s13 = scalar_lea.sflag [#allocation4], %s1332_s10  ;;  %s1002_s14 = scalar_lea.vmem %s708_s8, 128 }
 0x3ec   : > { %p1003_p2 = scmp.ne.s32.totalorder %s708_s8, %s1002_s14  ;;  %s1099_s17 = smov [#allocation3]  }
 0x3ed   : > { %s1006_s20 = sshll.u32 %s1099_s17, 4  ;;  %s1007_s20 = int_to_ptr.vmem [resolvable:$false] %s1006_s20 }
 0x3ee   : > { %p1004_p4 = pnand %p1003_p2, %p1184_p3  ;;  %s1008_s29 = scalar_lea.vmem %s1007_s20, 256 }
 0x3ef   : > { %p1009_p6 = scmp.lt.s32.totalorder %s708_s8, %s1007_s20  ;;  %p1010_p7 = scmp.lt.s32.totalorder %s1008_s29, %s1002_s14 }
 0x3f0   : > { %p1005_p5 = pneg %p1004_p4 }
 0x3f1   : > { %p1011_p8 = por %p1010_p7, %p1009_p6 }
 0x3f3   : > { %p1012_p10 = pnand %p1011_p8, %p1005_p5 }
 0x3f5   : > { %1015 = shalt.err (!%p1012_p10)
}
 0x3f6   : > { %s1016_s25 = scalar_lea.hbm %s705_s24, 128  ;;  %s1020_s11 = scalar_lea.hbm %s1314_s6, 256 }
 0x3f7   : > { %p1017_p11 = scmp.ne.s32.totalorder %s705_s24, %s1016_s25  ;;  %p1021_p0 = scmp.lt.s32.totalorder %s705_s24, %s1314_s6 }
 0x3f8   : > { %p1022_p1 = scmp.lt.s32.totalorder %s1020_s11, %s1016_s25 }
 0x3f9   : > { %p1018_p12 = pnand %p1017_p11, %p1184_p3 }
 0x3fa   : > { %p1023_p2 = por %p1022_p1, %p1021_p0 }
 0x3fb   : > { %p1019_p13 = pneg %p1018_p12 }
 0x3fd   : > { %p1024_p4 = pnand %p1023_p2, %p1019_p13 }
 0x3ff   : > { %1027 = shalt.err (!%p1024_p4)
}
 0x400   : > { %918 = dma.vmem_to_hbm [thread:$0]  (%p1184_p3), %s708_s8, 128, %s705_s24, %s694_s13  }
 0x401 PF: > { %s1333_s19 = sld [smem:[#allocation6_spill]]  ;;  %p924_p5 = scmp.ge.s32.totalorder %s1094_s28, 2 }
 0x403   : > { %p921_p6 = pnand %p924_p5, %p1194_p9 }
 0x405   : > { %p922_p7 = pneg %p921_p6 }
 0x407   : > { %s719_s21 = sand.u32 1, %s1333_s19  }
 0x408   : > { %s720_s23 = scalar_lea.sflag [#allocation4], %s719_s21 }
 0x409   : > { %1061 = dma.done.wait (%p922_p7), %s720_s23, 128  }
 0x40a   : > { %1063 = vsyncadd (%p922_p7), %s720_s23, 4294967168  ;;  %s19_s28 = sadd.s32 1, %s1094_s28   ;;  %s1335_s26 = sld [smem:[#allocation7_spill]] }
 0x40b   : > { %p16_p8 = scmp.ge.s32.totalorder %s19_s28, 18   ;;  %s1336_s23 = sld [smem:[#allocation13_spill]] }
 0x40c   : > { %s1337_s24 = sld [smem:[#allocation8_spill]]  ;;  %s1341_s21 = smov %s1070_s22 }
 0x40d   : > { %s1338_s25 = sld [smem:[#allocation9_spill]] }
 0x40e   : > { %s1339_s9 = sld [smem:[#allocation10_spill]] }
 0x40f   : > { %s1340_s27 = sld [smem:[#allocation11_spill]] }
 0x410   : > { %s1342_s22 = smov %s1335_s26  ;;  %18 = sbr.rel (!%p16_p8) target bundleno = 5 (0x5), region = 99 }
 0x414   : > { %s1343_s26 = smov %s1339_s9 }
 0x415   :  { %725 = vsyncpa [#allocation4], 1 }
 0x416   :  { %727 = vsyncpa [#allocation4 + $0x1], 1 }

</bundles_post_ra>
